<compile_context>
chip_gen: v7x
topology: tpu7x:2x2x1
jax: 0.10.0
libtpu: 0.0.40
codegen_flags: <defaults>
</compile_context>

<pallas_src>
import jax
import jax.numpy as jnp
import numpy as np
from jax.experimental import pallas as pl
from jax.experimental.pallas import tpu as pltpu

KH = KW = 2  # conv kernel size


def conv_mul_add_kernel(patch_ref, w_ref, b1_ref, out_ref):
    """out = x * (conv(x) + bias + 1), one MXU dot per image.

    patch_ref : (NB, KH*KW*C, H*W)  transposed im2col patch (rows 3C:4C are x itself)
    w_ref     : (Cout, KH*KW*C)     im2col weight
    b1_ref    : (Cout, 1)           bias + 1 (folded epilogue)
    out_ref   : (NB, Cout, H*W)     lane-dense; reshapes to NCHW for free in the wrapper
    """
    nb = patch_ref.shape[0]
    k = w_ref.shape[1]
    cin = k // (KH * KW)
    x_row0 = (KH * KW - 1) * cin           # start row of the (1,1) tap == x

    w = w_ref[...]                         # hoisted: loaded once, not per image
    b1 = b1_ref[...]

    for n in range(nb):                    # small static unroll (nb capped in the wrapper)
        p = patch_ref[n]                   # (KH*KW*C, H*W) -- fully lane/sublane dense
        v1 = jnp.dot(w, p, preferred_element_type=jnp.float32) + b1   # (Cout, H*W)
        out_ref[n] = p[x_row0:, :] * v1    # x * (conv + bias + 1)


def _num_tensorcores_per_chip():
    try:
        kind = jax.devices()[0].device_kind.lower()
    except Exception:
        return 1
    # dual-TensorCore / megacore generations; single-TC (v5e/v6e) otherwise
    return 2 if any(t in kind for t in ("v4", "v5p", "v7", "7x")) else 1


def _pick_block_n(n, c, cout, hw):
    """Images per grid step.

    Generation-aware: only force >=2 grid steps on dual-TC chips (feeds both cores);
    single-TC chips prefer the fewest, largest steps (less per-step overhead, bigger DMAs).
    VMEM-budget-driven: each in-flight image costs 2 double-buffered f32 blocks.
    """
    per_img = 2 * 4 * (KH * KW * c * hw + cout * hw)   # 2 buffers * 4 B * (patch + out)
    budget = 12 * 1024 * 1024                          # safely under v5e's 16 MiB scoped default
    # cap 8 keeps the static unroll tiny; per-step overhead is already <0.05 us/img there
    max_imgs = max(1, min(n, budget // per_img, 8))
    min_steps = 2 if (_num_tensorcores_per_chip() == 2 and n >= 2) else 1
    best = 1
    for cand in range(1, max_imgs + 1):
        if n % cand == 0 and n // cand >= min_steps:
            best = cand
    return best


def model_forward(x_nchw, w_oihw, bias, *, block_n=None):
    """x_nchw: (N, C, H, W) f32; w_oihw: (Cout, Cin, KH, KW); bias: (Cout,)."""
    N, C, H, W = x_nchw.shape
    Cout, Cin, kh_, kw_ = w_oihw.shape
    assert (kh_, kw_) == (KH, KW)
    # fused x * conv(x) epilogue (and the x-from-patch trick) requires Cin == Cout == C
    assert Cin == C and Cout == C, "fused epilogue assumes a 32->32 conv (Cin == Cout)"
    HW = H * W

    if block_n is None:
        block_n = _pick_block_n(N, C, Cout, HW)
    assert N % block_n == 0

    # --- wrapper-side transposed im2col ------------------------------------------------
    # top/left-only zero pad (the cropped-pad semantics); bottom/right rows never read.
    xpad = jnp.pad(x_nchw, ((0, 0), (0, 0), (1, 0), (1, 0)))      # (N, C, H+1, W+1)
    taps = [xpad[:, :, kh:kh + H, kw:kw + W].reshape(N, C, HW)
            for kh in range(KH) for kw in range(KW)]              # tap order (kh, kw)
    patch = jnp.concatenate(taps, axis=1)                         # (N, KH*KW*C, H*W)

    # (Cout, Cin, KH, KW) -> (Cout, KH, KW, Cin) -> (Cout, KH*KW*Cin), matches tap order
    w2 = jnp.transpose(w_oihw, (0, 2, 3, 1)).reshape(Cout, KH * KW * C)
    b1 = (bias + 1.0).reshape(Cout, 1)                            # folded epilogue constant

    grid = (N // block_n,)
    out = pl.pallas_call(
        conv_mul_add_kernel,
        out_shape=jax.ShapeDtypeStruct((N, Cout, HW), jnp.float32),
        grid=grid,
        in_specs=[
            pl.BlockSpec((block_n, KH * KW * C, HW), lambda n: (n, 0, 0)),
            pl.BlockSpec((Cout, KH * KW * C), lambda n: (0, 0)),
            pl.BlockSpec((Cout, 1), lambda n: (0, 0)),
        ],
        out_specs=pl.BlockSpec((block_n, Cout, HW), lambda n: (n, 0, 0)),
        compiler_params=pltpu.CompilerParams(dimension_semantics=("parallel",)),
    )(patch, w2, b1)

    return out.reshape(N, Cout, H, W)     # already NCHW; contiguous (free) reshape


def reference_forward(x_nchw, w_oihw, bias):
    """Pure-JAX reference (top/left-padded conv == cropped pad=1 conv), high precision."""
    v1 = jax.lax.conv_general_dilated(
        x_nchw, w_oihw, window_strides=(1, 1),
        padding=((1, 0), (1, 0)),
        dimension_numbers=("NCHW", "OIHW", "NCHW"),
        precision=jax.lax.Precision.HIGHEST,
    ) + bias.reshape(1, -1, 1, 1)
    return x_nchw + x_nchw * v1


if __name__ == "__main__":
    key = jax.random.PRNGKey(0)
    k_x, k_w, k_b = jax.random.split(key, 3)

    # small shapes consistent with the module: channels fixed at 32 by the 32->32 conv
    N, C, H, W = 2, 32, 16, 16
    x = jax.random.normal(k_x, (N, C, H, W), dtype=jnp.float32)

    # deterministic Conv2d-style init: U(-b, b), b = 1/sqrt(fan_in), fan_in = C*KH*KW
    fan_in = C * KH * KW
    bound = 1.0 / np.sqrt(fan_in)
    w = jax.random.uniform(k_w, (C, C, KH, KW), jnp.float32, -bound, bound)
    b = jax.random.uniform(k_b, (C,), jnp.float32, -bound, bound)

    out = model_forward(x, w, b)
    jax.block_until_ready(out)

    ref = reference_forward(x, w, b)
    # tolerance leaves headroom for MXU f32 matmul-decomposition differences vs. XLA conv
    np.testing.assert_allclose(np.asarray(out), np.asarray(ref), rtol=1e-3, atol=1e-3)

    print("KERNEL_OK")
</pallas_src>

<mosaic_0001>
module attributes {stable_mosaic.version = 11 : i64} {
  func.func @conv_mul_add_kernel(%arg0: i32, %arg1: memref<2x128x256xf32, #tpu.memory_space<vmem>>, %arg2: memref<32x128xf32, #tpu.memory_space<vmem>>, %arg3: memref<32x1xf32, #tpu.memory_space<vmem>>, %arg4: memref<2x32x256xf32, #tpu.memory_space<vmem>>) attributes {dimension_semantics = [#tpu.dimension_semantics<parallel>], iteration_bounds = array<i64: 1>, scalar_prefetch = 0 : i64, scratch_operands = 0 : i64, tpu.core_type = #tpu.core_type<tc>, window_params = [{transform_indices = @transform_0, window_bounds = array<i64: 2, 128, 256>}, {pipeline_mode = #tpu.pipeline_mode<synchronous>, transform_indices = @transform_1, window_bounds = array<i64: 32, 128>}, {pipeline_mode = #tpu.pipeline_mode<synchronous>, transform_indices = @transform_2, window_bounds = array<i64: 32, 1>}, {transform_indices = @transform_3, window_bounds = array<i64: 2, 32, 256>}]} {
    %c0 = arith.constant 0 : index
    %c0_0 = arith.constant 0 : index
    %0 = vector.load %arg2[%c0, %c0_0] : memref<32x128xf32, #tpu.memory_space<vmem>>, vector<32x128xf32>
    %c0_1 = arith.constant 0 : index
    %c0_2 = arith.constant 0 : index
    %1 = vector.load %arg3[%c0_1, %c0_2] : memref<32x1xf32, #tpu.memory_space<vmem>>, vector<32x1xf32>
    %c0_3 = arith.constant 0 : index
    %c0_4 = arith.constant 0 : index
    %c0_5 = arith.constant 0 : index
    %2 = vector.load %arg1[%c0_3, %c0_4, %c0_5] : memref<2x128x256xf32, #tpu.memory_space<vmem>>, vector<1x128x256xf32>
    %3 = vector.shape_cast %2 : vector<1x128x256xf32> to vector<128x256xf32>
    %cst = arith.constant dense<0.000000e+00> : vector<32x256xf32>
    %4 = tpu.matmul %0, %3, %cst {dimension_numbers = #tpu.dot_dimension_numbers<[1], [0], [0], [1], [0, 0, 1, 1], [], []>} : vector<32x128xf32>, vector<128x256xf32>, vector<32x256xf32> -> vector<32x256xf32>
    %5 = vector.broadcast %1 : vector<32x1xf32> to vector<32x256xf32>
    %6 = arith.addf %4, %5 : vector<32x256xf32>
    %7 = vector.extract_strided_slice %3 {offsets = [96, 0], sizes = [32, 256], strides = [1, 1]} : vector<128x256xf32> to vector<32x256xf32>
    %8 = arith.mulf %7, %6 : vector<32x256xf32>
    %c0_6 = arith.constant 0 : index
    %c0_7 = arith.constant 0 : index
    %c0_8 = arith.constant 0 : index
    %9 = vector.load %arg4[%c0_6, %c0_7, %c0_8] : memref<2x32x256xf32, #tpu.memory_space<vmem>>, vector<1x32x256xf32>
    %10 = vector.shape_cast %9 : vector<1x32x256xf32> to vector<32x256xf32>
    %11 = vector.shape_cast %8 : vector<32x256xf32> to vector<1x32x256xf32>
    tpu.vector_store %arg4[%c0_6, %c0_7, %c0_8], %11 {strides = array<i32>} : memref<2x32x256xf32, #tpu.memory_space<vmem>>, vector<1x32x256xf32>,
    %c1 = arith.constant 1 : index
    %c0_9 = arith.constant 0 : index
    %c0_10 = arith.constant 0 : index
    %12 = vector.load %arg1[%c1, %c0_9, %c0_10] : memref<2x128x256xf32, #tpu.memory_space<vmem>>, vector<1x128x256xf32>
    %13 = vector.shape_cast %12 : vector<1x128x256xf32> to vector<128x256xf32>
    %cst_11 = arith.constant dense<0.000000e+00> : vector<32x256xf32>
    %14 = tpu.matmul %0, %13, %cst_11 {dimension_numbers = #tpu.dot_dimension_numbers<[1], [0], [0], [1], [0, 0, 1, 1], [], []>} : vector<32x128xf32>, vector<128x256xf32>, vector<32x256xf32> -> vector<32x256xf32>
    %15 = vector.broadcast %1 : vector<32x1xf32> to vector<32x256xf32>
    %16 = arith.addf %14, %15 : vector<32x256xf32>
    %17 = vector.extract_strided_slice %13 {offsets = [96, 0], sizes = [32, 256], strides = [1, 1]} : vector<128x256xf32> to vector<32x256xf32>
    %18 = arith.mulf %17, %16 : vector<32x256xf32>
    %c1_12 = arith.constant 1 : index
    %c0_13 = arith.constant 0 : index
    %c0_14 = arith.constant 0 : index
    %19 = vector.load %arg4[%c1_12, %c0_13, %c0_14] : memref<2x32x256xf32, #tpu.memory_space<vmem>>, vector<1x32x256xf32>
    %20 = vector.shape_cast %19 : vector<1x32x256xf32> to vector<32x256xf32>
    %21 = vector.shape_cast %18 : vector<32x256xf32> to vector<1x32x256xf32>
    tpu.vector_store %arg4[%c1_12, %c0_13, %c0_14], %21 {strides = array<i32>} : memref<2x32x256xf32, #tpu.memory_space<vmem>>, vector<1x32x256xf32>,
    return
  }
  func.func @transform_0(%arg0: i32) -> (i32, i32, i32) {
    %c0_i32 = arith.constant 0 : i32
    %c0_i32_0 = arith.constant 0 : i32
    %c0_i32_1 = arith.constant 0 : i32
    return %arg0, %c0_i32, %c0_i32_0 : i32, i32, i32
  }
  func.func @transform_1(%arg0: i32) -> (i32, i32) {
    %c0_i32 = arith.constant 0 : i32
    %c0_i32_0 = arith.constant 0 : i32
    %c0_i32_1 = arith.constant 0 : i32
    return %c0_i32, %c0_i32_0 : i32, i32
  }
  func.func @transform_2(%arg0: i32) -> (i32, i32) {
    %c0_i32 = arith.constant 0 : i32
    %c0_i32_0 = arith.constant 0 : i32
    %c0_i32_1 = arith.constant 0 : i32
    return %c0_i32, %c0_i32_0 : i32, i32
  }
  func.func @transform_3(%arg0: i32) -> (i32, i32, i32) {
    %c0_i32 = arith.constant 0 : i32
    %c0_i32_0 = arith.constant 0 : i32
    %c0_i32_1 = arith.constant 0 : i32
    return %arg0, %c0_i32, %c0_i32_0 : i32, i32, i32
  }
}

</mosaic_0001>

<bundles_post_ra>
// kernel: tpu_custom_call.1
= control target key start
LH: loop header
LB: loop body
LE: loop exit
PB: predicated region body
PF: predicated region fallthrough
CT: control target
= control target key end

     0   :  { %8 = vsyncpa [#allocation3], 0  ;;  %s622_s0 = inlined_call_operand.hbm [shape: f32[2,128,256], index: 0, kind: input, shape index: {}]   ;;  %s623_s1 = inlined_call_operand.vmem [shape: f32[32,128], index: 1, kind: input, shape index: {}]   ;;  %s624_s2 = inlined_call_operand.vmem [shape: f32[32,1], index: 2, kind: input, shape index: {}]   ;;  %s625_s3 = inlined_call_operand.hbm [shape: f32[2,32,256], index: 3, kind: output, shape index: {}]  }
   0x1   :  { %9 = vsyncpa [#allocation4], 0  ;;  %s470_s12 = smov [#allocation2]   ;;  %s422_s16 = scalar_lea.hbm %s622_s0, 8192 }
   0x2   :  { %s15_s13 = sshll.u32 %s470_s12, 4  ;;  %p423_p0 = scmp.ne.s32.totalorder %s622_s0, %s422_s16  ;;  %s16_s13 = int_to_ptr.vmem [resolvable:$true] %s15_s13 }
   0x3   :  { %p426_p1 = scmp.lt.u32.totalorder %s422_s16, %s622_s0 }
   0x5   :  { %p428_p2 = pnand %p426_p1, %p423_p0 }
   0x7   :  { %431 = shalt.err (!%p428_p2)
}
   0x8   :  { %s432_s21 = scalar_lea.vmem %s16_s13, 8192  ;;  %p437_p4 = scmp.lt.s32.totalorder %s16_s13, %s16_s13 }
   0x9   :  { %p433_p3 = scmp.ne.s32.totalorder %s16_s13, %s432_s21  ;;  %p438_p5 = scmp.lt.s32.totalorder %s432_s21, %s432_s21 }
   0xb   :  { %p439_p6 = por %p438_p5, %p437_p4 }
   0xd   :  { %p440_p7 = pnand %p439_p6, %p433_p3 }
   0xf   :  { %443 = shalt.err (!%p440_p7)
}
  0x10   :  { %s471_s22 = smov 256   ;;  %s472_s23 = smov 16  }
  0x11   :  { %21 = dma.hbm_to_vmem [thread:$0]  %s622_s0, 8192, %s16_s13, [#allocation3], %s471_s22, %s471_s22, %s472_s23  }
  0x12   :  { %466 = dma.done.wait [#allocation3], 8192  }
  0x13   :  { %467 = vsyncadd [#allocation3], 4294959104  ;;  %v473_v0 = vmov 0.0   ;;  %v474_v1 = vmov 0   ;;  %v38_v2 = vld [vmem:[#allocation2 + $0x8] sm:$0xff]  ;;  %v40_v3 = vld [vmem:[#allocation2 + $0x18] sm:$0xff] }
  0x14   :  { %153 = vmatprep.mubr.f32.mxu0 %v473_v0  ;;  %291 = vmatprep.mubr.f32.mxu1 %v473_v0  ;;  %v196_v4 = vld [vmem:[#allocation2 + $0x108] sm:$0xff]  ;;  %v350_v5 = vpack.c.bf16 %v40_v3, %v38_v2  ;;  %v198_v6 = vld [vmem:[#allocation2 + $0x118] sm:$0xff]  ;;  %v37_v7 = vld [vmem:[#allocation2] sm:$0xff] }
  0x15   :  { %420 = vset.pattern.permute.xlu0 %v474_v1  ;;  %421 = vset.pattern.permute.xlu1 %v474_v1  ;;  %v39_v8 = vld [vmem:[#allocation2 + $0x10] sm:$0xff]  ;;  %v382_v9 = vpack.c.bf16 %v198_v6, %v196_v4  ;;  %v195_v11 = vld [vmem:[#allocation2 + $0x100] sm:$0xff]  ;;  %v42_v13 = vld [vmem:[#allocation2 + $0x28] sm:$0xff] }
  0x16   :  { %v352_v10 = vpack.c.bf16 %v39_v8, %v37_v7  ;;  %v197_v12 = vld [vmem:[#allocation2 + $0x110] sm:$0xff]  ;;  %351 = vmatprep.subr.bf16.mxu0 %v350_v5  ;;  %v44_v15 = vld [vmem:[#allocation2 + $0x38] sm:$0xff]  ;;  %v200_v16 = vld [vmem:[#allocation2 + $0x128] sm:$0xff] }
  0x17   :  { %v384_v14 = vpack.c.bf16 %v197_v12, %v195_v11  ;;  %v202_v17 = vld [vmem:[#allocation2 + $0x138] sm:$0xff]  ;;  %383 = vmatprep.subr.bf16.mxu1 %v382_v9  ;;  %v354_v18 = vpack.c.bf16 %v44_v15, %v42_v13  ;;  %v41_v20 = vld [vmem:[#allocation2 + $0x20] sm:$0xff]  ;;  %v43_v21 = vld [vmem:[#allocation2 + $0x30] sm:$0xff] }
  0x18   :  { %353 = vmatpush1.bf16.msra.mxu0 %v352_v10  ;;  %v386_v19 = vpack.c.bf16 %v202_v17, %v200_v16  ;;  %v199_v22 = vld [vmem:[#allocation2 + $0x120] sm:$0xff]  ;;  %v356_v23 = vpack.c.bf16 %v43_v21, %v41_v20  ;;  %v201_v24 = vld [vmem:[#allocation2 + $0x130] sm:$0xff]  ;;  %v46_v25 = vld [vmem:[#allocation2 + $0x48] sm:$0xff] }
  0x19   :  { %385 = vmatpush1.bf16.msra.mxu1 %v384_v14  ;;  %v48_v26 = vld [vmem:[#allocation2 + $0x58] sm:$0xff]  ;;  %355 = vmatprep.subr.bf16.mxu0 %v354_v18  ;;  %v388_v27 = vpack.c.bf16 %v201_v24, %v199_v22  ;;  %v204_v29 = vld [vmem:[#allocation2 + $0x148] sm:$0xff]  ;;  %v45_v31 = vld [vmem:[#allocation2 + $0x40] sm:$0xff] }
  0x1a   :  { %387 = vmatprep.subr.bf16.mxu1 %v386_v19  ;;  %v358_v28 = vpack.c.bf16 %v48_v26, %v46_v25  ;;  %v206_v30 = vld [vmem:[#allocation2 + $0x158] sm:$0xff]  ;;  %v47_v33 = vld [vmem:[#allocation2 + $0x50] sm:$0xff]  ;;  %v203_v34 = vld [vmem:[#allocation2 + $0x140] sm:$0xff] }
  0x1b   :  { %v390_v32 = vpack.c.bf16 %v206_v30, %v204_v29  ;;  %v205_v35 = vld [vmem:[#allocation2 + $0x150] sm:$0xff]  ;;  %v360_v36 = vpack.c.bf16 %v47_v33, %v45_v31  ;;  %v50_v37 = vld [vmem:[#allocation2 + $0x68] sm:$0xff]  ;;  %v52_v38 = vld [vmem:[#allocation2 + $0x78] sm:$0xff] }
  0x1c   :  { %357 = vmatpush1.bf16.msra.mxu0 %v356_v23  ;;  %v208_v39 = vld [vmem:[#allocation2 + $0x168] sm:$0xff]  ;;  %v392_v40 = vpack.c.bf16 %v205_v35, %v203_v34  ;;  %v362_v41 = vpack.c.bf16 %v52_v38, %v50_v37  ;;  %v210_v42 = vld [vmem:[#allocation2 + $0x178] sm:$0xff]  ;;  %v49_v43 = vld [vmem:[#allocation2 + $0x60] sm:$0xff] }
  0x1d   :  { %389 = vmatpush1.bf16.msra.mxu1 %v388_v27  ;;  %359 = vmatprep.subr.bf16.mxu0 %v358_v28  ;;  %v51_v44 = vld [vmem:[#allocation2 + $0x70] sm:$0xff]  ;;  %v394_v45 = vpack.c.bf16 %v210_v42, %v208_v39  ;;  %v207_v46 = vld [vmem:[#allocation2 + $0x160] sm:$0xff]  ;;  %v54_v48 = vld [vmem:[#allocation2 + $0x88] sm:$0xff] }
  0x1e   :  { %391 = vmatprep.subr.bf16.mxu1 %v390_v32  ;;  %v209_v47 = vld [vmem:[#allocation2 + $0x170] sm:$0xff]  ;;  %v56_v49 = vld [vmem:[#allocation2 + $0x98] sm:$0xff]  ;;  %v212_v50 = vld [vmem:[#allocation2 + $0x188] sm:$0xff]  ;;  %v364_v52 = vpack.c.bf16 %v51_v44, %v49_v43 }
  0x1f   :  { %v214_v51 = vld [vmem:[#allocation2 + $0x198] sm:$0xff]  ;;  %v396_v53 = vpack.c.bf16 %v209_v47, %v207_v46  ;;  %v366_v54 = vpack.c.bf16 %v56_v49, %v54_v48  ;;  %v53_v55 = vld [vmem:[#allocation2 + $0x80] sm:$0xff]  ;;  %v55_v56 = vld [vmem:[#allocation2 + $0x90] sm:$0xff] }
  0x20   :  { %361 = vmatpush1.bf16.msra.mxu0 %v360_v36  ;;  %v211_v57 = vld [vmem:[#allocation2 + $0x180] sm:$0xff]  ;;  %v398_v58 = vpack.c.bf16 %v214_v51, %v212_v50  ;;  %v213_v59 = vld [vmem:[#allocation2 + $0x190] sm:$0xff]  ;;  %v58_v60 = vld [vmem:[#allocation2 + $0xa8] sm:$0xff]  ;;  %v368_v1 = vpack.c.bf16 %v55_v56, %v53_v55 }
  0x21   :  { %393 = vmatpush1.bf16.msra.mxu1 %v392_v40  ;;  %363 = vmatprep.subr.bf16.mxu0 %v362_v41  ;;  %v60_v61 = vld [vmem:[#allocation2 + $0xb8] sm:$0xff]  ;;  %v216_v62 = vld [vmem:[#allocation2 + $0x1a8] sm:$0xff]  ;;  %v400_v2 = vpack.c.bf16 %v213_v59, %v211_v57  ;;  %v57_v4 = vld [vmem:[#allocation2 + $0xa0] sm:$0xff] }
  0x22   :  { %395 = vmatprep.subr.bf16.mxu1 %v394_v45  ;;  %v218_v63 = vld [vmem:[#allocation2 + $0x1b8] sm:$0xff]  ;;  %v370_v3 = vpack.c.bf16 %v60_v61, %v58_v60  ;;  %v59_v5 = vld [vmem:[#allocation2 + $0xb0] sm:$0xff]  ;;  %v215_v6 = vld [vmem:[#allocation2 + $0x1a0] sm:$0xff] }
  0x23   :  { %v402_v7 = vpack.c.bf16 %v218_v63, %v216_v62  ;;  %v217_v8 = vld [vmem:[#allocation2 + $0x1b0] sm:$0xff]  ;;  %v513_v9 = vld [vmem:[#allocation2 + $0xc8] sm:$0xff]  ;;  %v515_v10 = vld [vmem:[#allocation2 + $0xd8] sm:$0xff]  ;;  %v372_v13 = vpack.c.bf16 %v59_v5, %v57_v4 }
  0x24   :  { %365 = vmatpush1.bf16.msra.mxu0 %v364_v52  ;;  %v517_v11 = vld [vmem:[#allocation2 + $0x1c8] sm:$0xff]  ;;  %v519_v12 = vld [vmem:[#allocation2 + $0x1d8] sm:$0xff]  ;;  %v521_v14 = vld [vmem:[#allocation2 + $0xc0] sm:$0xff]  ;;  %v404_v15 = vpack.c.bf16 %v217_v8, %v215_v6  ;;  %v374_v16 = vpack.c.bf16 %v515_v10, %v513_v9 }
  0x25   :  { %397 = vmatpush1.bf16.msra.mxu1 %v396_v53  ;;  %367 = vmatprep.subr.bf16.mxu0 %v366_v54  ;;  %v525_v17 = vld [vmem:[#allocation2 + $0xd0] sm:$0xff]  ;;  %v527_v18 = vld [vmem:[#allocation2 + $0x1c0] sm:$0xff]  ;;  %v406_v20 = vpack.c.bf16 %v519_v12, %v517_v11  ;;  %v533_v21 = vld [vmem:[#allocation2 + $0xe8] sm:$0xff] }
  0x26   :  { %399 = vmatprep.subr.bf16.mxu1 %v398_v58  ;;  %v529_v19 = vld [vmem:[#allocation2 + $0x1d0] sm:$0xff]  ;;  %v535_v22 = vld [vmem:[#allocation2 + $0xf8] sm:$0xff]  ;;  %v33_v23 = vld [vmem:[%s624_s2] sm:$0xff]  ;;  %v376_v27 = vpack.c.bf16 %v525_v17, %v521_v14 }
  0x27   :  { %v540_v24 = vld [vmem:[#allocation2 + $0x1e8] sm:$0xff]  ;;  %v542_v25 = vld [vmem:[#allocation2 + $0x1f8] sm:$0xff]  ;;  %71 = vperm.xlu0 %420, %v33_v23   ;;  %v35_v26 = vld [vmem:[%s624_s2 + $0x10] sm:$0xff]  ;;  %v408_v29 = vpack.c.bf16 %v529_v19, %v527_v18  ;;  %v378_v30 = vpack.c.bf16 %v535_v22, %v533_v21 }
  0x28   :  { %369 = vmatpush1.bf16.msra.mxu0 %v368_v1  ;;  %v34_v28 = vld [vmem:[%s624_s2 + $0x8] sm:$0xff]  ;;  %81 = vperm.xlu1 %421, %v35_v26   ;;  %v556_v31 = vld [vmem:[#allocation2 + $0xe0] sm:$0xff]  ;;  %v558_v32 = vld [vmem:[#allocation2 + $0xf0] sm:$0xff]  ;;  %v410_v34 = vpack.c.bf16 %v542_v25, %v540_v24 }
  0x29   :  { %401 = vmatpush1.bf16.msra.mxu1 %v400_v2  ;;  %371 = vmatprep.subr.bf16.mxu0 %v370_v3  ;;  %v36_v33 = vld [vmem:[%s624_s2 + $0x18] sm:$0xff]  ;;  %v565_v35 = vld [vmem:[#allocation2 + $0x1e0] sm:$0xff]  ;;  %v567_v36 = vld [vmem:[#allocation2 + $0x1f0] sm:$0xff]  ;;  %v380_v37 = vpack.c.bf16 %v558_v32, %v556_v31 }
  0x2a   :  { %403 = vmatprep.subr.bf16.mxu1 %v402_v7  ;;  %v412_v38 = vpack.c.bf16 %v567_v36, %v565_v35  ;;  %v29_v39 = vld [vmem:[%s623_s1] sm:$0xff]  ;;  %v30_v40 = vld [vmem:[%s623_s1 + $0x8] sm:$0xff]  ;;  %v31_v41 = vld [vmem:[%s623_s1 + $0x10] sm:$0xff] }
  0x2b   :  { %76 = vperm.xlu0 %420, %v34_v28   ;;  %v32_v42 = vld [vmem:[%s623_s1 + $0x18] sm:$0xff]  ;;  %s475_s1 = smov [#allocation5]  }
  0x2c   :  { %373 = vmatpush1.bf16.msra.mxu0 %v372_v13  ;;  %86 = vperm.xlu1 %421, %v36_v33   ;;  %s338_s13 = sshll.u32 %s475_s1, 4  ;;  %s339_s13 = int_to_ptr.vmem [resolvable:$true] %s338_s13 }
  0x2d   :  { %405 = vmatpush1.bf16.msra.mxu1 %v404_v15  ;;  %375 = vmatprep.subr.bf16.mxu0 %v374_v16  ;;  %s444_s14 = scalar_lea.vmem %s339_s13, 2048  ;;  %p449_p9 = scmp.lt.s32.totalorder %s339_s13, %s339_s13 }
  0x2e   :  { %407 = vmatprep.subr.bf16.mxu1 %v406_v20  ;;  %p445_p8 = scmp.ne.s32.totalorder %s339_s13, %s444_s14  ;;  %p450_p10 = scmp.lt.s32.totalorder %s444_s14, %s444_s14 }
  0x30   :  { %377 = vmatpush1.bf16.msra.mxu0 %v376_v27  ;;  %p451_p11 = por %p450_p10, %p449_p9 }
  0x31   :  { %409 = vmatpush1.bf16.msra.mxu1 %v408_v29  ;;  %379 = vmatprep.subr.bf16.mxu0 %v378_v30 }
  0x32   :  { %411 = vmatprep.subr.bf16.mxu1 %v410_v34  ;;  %p452_p12 = pnand %p451_p11, %p445_p8 }
  0x34   :  { %381 = vmatpush1.bf16.msra.mxu0 %v380_v37 }
  0x35   :  { %413 = vmatpush1.bf16.msra.mxu1 %v412_v38 }
  0x37   :  { %154 = vmatmul.mubr.f32.vlgmr.msra.gmra.mrb[0].mxu0 %v29_v39 }
  0x38   :  { %292 = vmatmul.mubr.f32.vlgmr.msra.gmra.mrb[0].mxu1 %v29_v39  ;;  %159 = vmatprep.mubr.f32.mxu0 %v473_v0 }
  0x39   :  { %297 = vmatprep.mubr.f32.mxu1 %v473_v0 }
  0x3b   :  { %160 = vmatmul.mubr.f32.gmra.mrb[2].mxu0 %v30_v40 }
  0x3c   :  { %298 = vmatmul.mubr.f32.gmra.mrb[2].mxu1 %v30_v40  ;;  %165 = vmatprep.mubr.f32.mxu0 %v473_v0 }
  0x3d   :  { %303 = vmatprep.mubr.f32.mxu1 %v473_v0 }
  0x3f   :  { %166 = vmatmul.mubr.f32.gmra.mrb[4].mxu0 %v31_v41 }
  0x40   :  { %304 = vmatmul.mubr.f32.gmra.mrb[4].mxu1 %v31_v41  ;;  %171 = vmatprep.mubr.f32.mxu0 %v473_v0 }
  0x41   :  { %309 = vmatprep.mubr.f32.mxu1 %v473_v0 }
  0x43   :  { %172 = vmatmul.mubr.f32.gmra.mrb[6].mxu0 %v32_v42 }
  0x44   :  { %310 = vmatmul.mubr.f32.gmra.mrb[6].mxu1 %v32_v42 }
  0xa6   :  { %v72_v43 = vpop.permute.xlu0 %71 }
  0xa7   :  { %v82_v61 = vpop.permute.xlu1 %81 }
  0xaa   :  { %v77_v51 = vpop.permute.xlu0 %76 }
 0x10a   :  { %v155_v44 = vpop.f32.mrb[0].mxu0 }
 0x10b   :  { %v156_v45 = vadd.f32 %v155_v44, %v72_v43  ;;  %v293_v46 = vpop.f32.mrb[0].mxu1  ;;  %v157_v47 = vpop.f32.mrb[1].mxu0 }
 0x10c   :  { %v294_v48 = vadd.f32 %v293_v46, %v72_v43  ;;  %v158_v49 = vadd.f32 %v157_v47, %v72_v43  ;;  %v295_v50 = vpop.f32.mrb[1].mxu1 }
 0x10d   :  { %v178_v52 = vmul.f32 %v156_v45, %v521_v14  ;;  %v296_v53 = vadd.f32 %v295_v50, %v72_v43 }
 0x10e   :  { %v316_v54 = vmul.f32 %v294_v48, %v527_v18  ;;  %v179_v55 = vmul.f32 %v158_v49, %v513_v9  ;;  %v161_v56 = vpop.f32.mrb[2].mxu0  ;;  %v87_v18 = vpop.permute.xlu1 %86 }
 0x10f   :  { %186 = vst [vmem:[#allocation5] sm:$0xff] %v178_v52  ;;  %v317_v0 = vmul.f32 %v296_v53, %v517_v11  ;;  %v162_v57 = vadd.f32 %v161_v56, %v77_v51  ;;  %v299_v58 = vpop.f32.mrb[2].mxu1  ;;  %v163_v59 = vpop.f32.mrb[3].mxu0 }
 0x110   :  { %325 = vst [vmem:[#allocation5 + $0x40] sm:$0xff] %v316_v54  ;;  %187 = vst [vmem:[#allocation5 + $0x8] sm:$0xff] %v179_v55  ;;  %v300_v60 = vadd.f32 %v299_v58, %v77_v51  ;;  %v164_v62 = vadd.f32 %v163_v59, %v77_v51  ;;  %v301_v63 = vpop.f32.mrb[3].mxu1 }
 0x111   :  { %326 = vst [vmem:[#allocation5 + $0x48] sm:$0xff] %v317_v0  ;;  %v180_v1 = vmul.f32 %v162_v57, %v525_v17  ;;  %v302_v2 = vadd.f32 %v301_v63, %v77_v51 }
 0x112   :  { %v318_v3 = vmul.f32 %v300_v60, %v529_v19  ;;  %v181_v4 = vmul.f32 %v164_v62, %v515_v10  ;;  %v167_v5 = vpop.f32.mrb[4].mxu0 }
 0x113   :  { %188 = vst [vmem:[#allocation5 + $0x10] sm:$0xff] %v180_v1  ;;  %v319_v6 = vmul.f32 %v302_v2, %v519_v12  ;;  %v168_v7 = vadd.f32 %v167_v5, %v82_v61  ;;  %v305_v8 = vpop.f32.mrb[4].mxu1  ;;  %v169_v9 = vpop.f32.mrb[5].mxu0 }
 0x114   :  { %327 = vst [vmem:[#allocation5 + $0x50] sm:$0xff] %v318_v3  ;;  %189 = vst [vmem:[#allocation5 + $0x18] sm:$0xff] %v181_v4  ;;  %v306_v11 = vadd.f32 %v305_v8, %v82_v61  ;;  %v170_v13 = vadd.f32 %v169_v9, %v82_v61  ;;  %v307_v14 = vpop.f32.mrb[5].mxu1 }
 0x115   :  { %328 = vst [vmem:[#allocation5 + $0x58] sm:$0xff] %v319_v6  ;;  %v182_v15 = vmul.f32 %v168_v7, %v556_v31  ;;  %v308_v16 = vadd.f32 %v307_v14, %v82_v61 }
 0x116   :  { %v320_v17 = vmul.f32 %v306_v11, %v565_v35  ;;  %v183_v10 = vmul.f32 %v170_v13, %v533_v21  ;;  %v173_v19 = vpop.f32.mrb[6].mxu0 }
 0x117   :  { %190 = vst [vmem:[#allocation5 + $0x20] sm:$0xff] %v182_v15  ;;  %v321_v12 = vmul.f32 %v308_v16, %v540_v24  ;;  %v174_v20 = vadd.f32 %v173_v19, %v87_v18  ;;  %v311_v23 = vpop.f32.mrb[6].mxu1  ;;  %v175_v26 = vpop.f32.mrb[7].mxu0 }
 0x118   :  { %329 = vst [vmem:[#allocation5 + $0x60] sm:$0xff] %v320_v17  ;;  %191 = vst [vmem:[#allocation5 + $0x28] sm:$0xff] %v183_v10  ;;  %v312_v27 = vadd.f32 %v311_v23, %v87_v18  ;;  %v176_v28 = vadd.f32 %v175_v26, %v87_v18  ;;  %v313_v29 = vpop.f32.mrb[7].mxu1 }
 0x119   :  { %330 = vst [vmem:[#allocation5 + $0x68] sm:$0xff] %v321_v12  ;;  %v184_v30 = vmul.f32 %v174_v20, %v558_v32  ;;  %v314_v31 = vadd.f32 %v313_v29, %v87_v18 }
 0x11a   :  { %v322_v21 = vmul.f32 %v312_v27, %v567_v36  ;;  %v185_v33 = vmul.f32 %v176_v28, %v535_v22 }
 0x11b   :  { %192 = vst [vmem:[#allocation5 + $0x30] sm:$0xff] %v184_v30  ;;  %v323_v24 = vmul.f32 %v314_v31, %v542_v25 }
 0x11c   :  { %331 = vst [vmem:[#allocation5 + $0x70] sm:$0xff] %v322_v21  ;;  %193 = vst [vmem:[#allocation5 + $0x38] sm:$0xff] %v185_v33 }
 0x11d   :  { %332 = vst [vmem:[#allocation5 + $0x78] sm:$0xff] %v323_v24 }
 0x11e   :  { %455 = shalt.err (!%p452_p12)
}
 0x11f   :  { %s456_s17 = scalar_lea.hbm %s625_s3, 2048 }
 0x120   :  { %p457_p13 = scmp.ne.s32.totalorder %s625_s3, %s456_s17  ;;  %p460_p0 = scmp.lt.u32.totalorder %s456_s17, %s625_s3 }
 0x122   :  { %p462_p1 = pnand %p460_p0, %p457_p13 }
 0x124   :  { %465 = shalt.err (!%p462_p1)
}
 0x125   :  { %344 = dma.vmem_to_hbm [thread:$0]  %s339_s13, 2048, %s625_s3, [#allocation4], %s471_s22, %s471_s22, %s472_s23  }
 0x126   :  { %468 = dma.done.wait [#allocation4], 2048  }
 0x127   :  { %469 = vsyncadd [#allocation4], 4294965248 }
 0x128   :  { %348 = vsyncpa [#allocation3], 1 }
 0x129   :  { %349 = vsyncpa [#allocation4], 1 }

</bundles_post_ra>
